<compile_context>
chip_gen: v7x
topology: tpu7x:2x2x1
jax: 0.10.0
libtpu: 0.0.40
codegen_flags: <defaults>
</compile_context>

<pallas_src>
import functools
import math

import jax
import jax.numpy as jnp
from jax.experimental import pallas as pl
from jax.experimental.pallas import tpu as pltpu

T_CONST = 2.21
A_CONST = math.pi / 2.0 / T_CONST

_LANES = 128  # lane-dense, unmasked vld/vst width


def _srelu_kernel(x_ref, o_ref):
    # Load in the original dtype, compute in f32 in-register, store back.
    x = x_ref[...].astype(jnp.float32)
    t = jnp.float32(T_CONST)
    a = jnp.float32(A_CONST)
    # TODO(synk): if a bundle dump ever shows this kernel VALU-bound on v7x/v6e,
    # replace jnp.sin with a bounded-range odd minimax polynomial on u = a*x
    # (|u| < pi/2 in the interior branch) to stay on the HBM roofline.
    mid = x * (jnp.sin(a * x) + jnp.float32(1.0)) * jnp.float32(0.5)
    # x <= -t -> 0 ; -t < x < t -> mid ; x >= t -> x
    out = jnp.where(x <= -t, jnp.float32(0.0), jnp.where(x < t, mid, x))
    o_ref[...] = out.astype(o_ref.dtype)


def _srelu_jnp(x):
    """Pure-JAX elementwise SReLU (used only for the tiny <128-elem ragged tail)."""
    t = jnp.float32(T_CONST)
    a = jnp.float32(A_CONST)
    xf = x.astype(jnp.float32)
    mid = xf * (jnp.sin(a * xf) + 1.0) * 0.5
    return jnp.where(xf <= -t, 0.0, jnp.where(xf < t, mid, xf)).astype(x.dtype)


@functools.lru_cache(maxsize=None)
def _chip_tuning():
    """Returns (block_bytes, vmem_limit_bytes_or_None, split_for_two_cores)."""
    kind = ""
    try:
        kind = jax.devices()[0].device_kind.lower()
    except Exception:
        pass
    is_v7 = ("v7" in kind) or ("7x" in kind)
    is_v6 = "v6" in kind
    if is_v6 or is_v7:
        block_bytes = 4 * 1024 * 1024
        # 1 input + 1 output, double-buffered = 4 live blocks, plus headroom
        # for compiler-internal scratch (24 MiB << v6e 32 MiB / v7x 64 MiB).
        vmem_limit = 4 * block_bytes + 8 * 1024 * 1024
    else:
        # v5e (16 MiB scoped-VMEM default) and unknown chips: stay conservative.
        block_bytes = 2 * 1024 * 1024
        vmem_limit = None
    return block_bytes, vmem_limit, is_v7


def _srelu_slab(slab):
    """Run the kernel over a (rows, 128) slab."""
    rows, lanes = slab.shape
    dtype = slab.dtype
    itemsize = jnp.dtype(dtype).itemsize
    # minimum sublane tiling per dtype packing: f32 -> 8, bf16/f16 -> 16, i8/fp8 -> 32
    min_rows = {4: 8, 2: 16, 1: 32}.get(itemsize, 8)
    block_bytes, vmem_limit, split_two_cores = _chip_tuning()

    if rows <= min_rows:
        # Single block equal to the full array extent (always legal).
        tile_rows = rows
    else:
        target_rows = max(
            min_rows, (block_bytes // (lanes * itemsize)) // min_rows * min_rows
        )
        rows_ceil = ((rows + min_rows - 1) // min_rows) * min_rows
        tile_rows = min(target_rows, rows_ceil)
        if split_two_cores and rows >= 4 * min_rows:
            # v7x: aim for >= 4 grid steps (>= 2 blocks per TensorCore) so the
            # software pipeline overlaps DMA with compute on both cores.
            per_core_cap = max(min_rows, (rows // 4) // min_rows * min_rows)
            tile_rows = min(tile_rows, per_core_cap)

    grid = (pl.cdiv(rows, tile_rows),)
    n_elems = rows * lanes
    cost = pl.CostEstimate(
        flops=12 * n_elems,
        transcendentals=n_elems,
        bytes_accessed=2 * n_elems * itemsize,
    )

    return pl.pallas_call(
        _srelu_kernel,
        out_shape=jax.ShapeDtypeStruct((rows, lanes), dtype),
        grid_spec=pltpu.PrefetchScalarGridSpec(
            num_scalar_prefetch=0,
            grid=grid,
            in_specs=[pl.BlockSpec((tile_rows, lanes), lambda i: (i, 0))],
            out_specs=pl.BlockSpec((tile_rows, lanes), lambda i: (i, 0)),
        ),
        compiler_params=pltpu.CompilerParams(
            dimension_semantics=("parallel",),
            vmem_limit_bytes=vmem_limit,
        ),
        cost_estimate=cost,
    )(slab)


def srelu(x):
    """Apply SReLU elementwise. Accepts any shape; NCHW for conv-style inputs."""
    orig_shape = x.shape
    n = x.size
    if n == 0:
        return x
    flat = x.reshape(-1)
    n_bulk = (n // _LANES) * _LANES

    if n_bulk == n:
        # Fast path: pure metadata reshape into a lane-dense slab.
        return _srelu_slab(flat.reshape(n // _LANES, _LANES)).reshape(orig_shape)
    if n_bulk == 0:
        # Tiny (<128 elem) tensor: not worth a kernel launch.
        return _srelu_jnp(flat).reshape(orig_shape)
    # Ragged: kernel on the 128-aligned bulk, plain jnp on the tiny tail.
    bulk_out = _srelu_slab(flat[:n_bulk].reshape(n_bulk // _LANES, _LANES)).reshape(-1)
    tail_out = _srelu_jnp(flat[n_bulk:])
    return jnp.concatenate([bulk_out, tail_out]).reshape(orig_shape)


def _srelu_ref(x):
    """Pure-JAX reference mirroring the torch _forward."""
    t = jnp.float32(T_CONST)
    a = jnp.float32(A_CONST)
    xf = x.astype(jnp.float32)
    mid = xf * (jnp.sin(a * xf) + 1.0) / 2.0
    return jnp.where(xf <= -t, 0.0, jnp.where(xf < t, mid, xf)).astype(x.dtype)


if __name__ == "__main__":
    key = jax.random.PRNGKey(0)

    # NCHW conv-style input: batch=2, channels=4, spatial=16x16 (multiple of 128).
    x = jax.random.normal(key, (2, 4, 16, 16), dtype=jnp.float32) * 3.0
    y = jax.block_until_ready(srelu(x))
    y_ref = _srelu_ref(x)
    assert y.shape == x.shape and y.dtype == x.dtype
    assert jnp.allclose(y, y_ref, atol=1e-6, rtol=1e-6)

    # Truly ragged element count (not a multiple of 128): bulk + tail path.
    x2 = jax.random.normal(jax.random.PRNGKey(1), (3, 5, 7, 11), dtype=jnp.float32) * 3.0
    y2 = jax.block_until_ready(srelu(x2))
    assert jnp.allclose(y2, _srelu_ref(x2), atol=1e-6, rtol=1e-6)

    # Multiple of 128 but not of 1024 (rows not a multiple of 8): masked tail block.
    x3 = jax.random.normal(jax.random.PRNGKey(2), (5, 384), dtype=jnp.float32) * 3.0
    y3 = jax.block_until_ready(srelu(x3))
    assert jnp.allclose(y3, _srelu_ref(x3), atol=1e-6, rtol=1e-6)

    # bf16 input: in-kernel upcast/downcast path.
    x4 = (jax.random.normal(jax.random.PRNGKey(3), (4, 8, 32), dtype=jnp.float32) * 3.0
          ).astype(jnp.bfloat16)
    y4 = jax.block_until_ready(srelu(x4))
    assert y4.dtype == jnp.bfloat16
    assert jnp.allclose(y4.astype(jnp.float32), _srelu_ref(x4).astype(jnp.float32),
                        atol=2e-2, rtol=2e-2)

    print("KERNEL_OK")
</pallas_src>

<mosaic_0001>
module attributes {stable_mosaic.version = 11 : i64} {
  func.func @_srelu_kernel(%arg0: i32, %arg1: memref<16x128xf32, #tpu.memory_space<vmem>>, %arg2: memref<16x128xf32, #tpu.memory_space<vmem>>) attributes {dimension_semantics = [#tpu.dimension_semantics<parallel>], iteration_bounds = array<i64: 1>, scalar_prefetch = 0 : i64, scratch_operands = 0 : i64, tpu.core_type = #tpu.core_type<tc>, window_params = [{transform_indices = @transform_0, window_bounds = array<i64: 16, 128>}, {transform_indices = @transform_1, window_bounds = array<i64: 16, 128>}]} {
    %c0 = arith.constant 0 : index
    %c0_0 = arith.constant 0 : index
    %0 = vector.load %arg1[%c0, %c0_0] : memref<16x128xf32, #tpu.memory_space<vmem>>, vector<16x128xf32>
    %cst = arith.constant 0.710767567 : f32
    %1 = vector.broadcast %cst : f32 to vector<16x128xf32>
    %2 = arith.mulf %1, %0 : vector<16x128xf32>
    %3 = math.sin %2 : vector<16x128xf32>
    %cst_1 = arith.constant 1.000000e+00 : f32
    %4 = vector.broadcast %cst_1 : f32 to vector<16x128xf32>
    %5 = arith.addf %3, %4 : vector<16x128xf32>
    %6 = arith.mulf %0, %5 : vector<16x128xf32>
    %cst_2 = arith.constant 5.000000e-01 : f32
    %7 = vector.broadcast %cst_2 : f32 to vector<16x128xf32>
    %8 = arith.mulf %6, %7 : vector<16x128xf32>
    %cst_3 = arith.constant 0.000000e+00 : f32
    %cst_4 = arith.constant 2.210000e+00 : f32
    %9 = arith.subf %cst_3, %cst_4 : f32
    %10 = vector.broadcast %9 : f32 to vector<16x128xf32>
    %11 = arith.cmpf ole, %0, %10 : vector<16x128xf32>
    %cst_5 = arith.constant 2.210000e+00 : f32
    %12 = vector.broadcast %cst_5 : f32 to vector<16x128xf32>
    %13 = arith.cmpf olt, %0, %12 : vector<16x128xf32>
    %14 = arith.select %13, %8, %0 : vector<16x128xi1>, vector<16x128xf32>
    %cst_6 = arith.constant 0.000000e+00 : f32
    %15 = vector.broadcast %cst_6 : f32 to vector<16x128xf32>
    %16 = arith.select %11, %15, %14 : vector<16x128xi1>, vector<16x128xf32>
    %c0_7 = arith.constant 0 : index
    %c0_8 = arith.constant 0 : index
    %17 = vector.load %arg2[%c0_7, %c0_8] : memref<16x128xf32, #tpu.memory_space<vmem>>, vector<16x128xf32>
    tpu.vector_store %arg2[%c0_7, %c0_8], %16 {strides = array<i32>} : memref<16x128xf32, #tpu.memory_space<vmem>>, vector<16x128xf32>,
    return
  }
  func.func @transform_0(%arg0: i32) -> (i32, i32) {
    %c0_i32 = arith.constant 0 : i32
    %c0_i32_0 = arith.constant 0 : i32
    return %arg0, %c0_i32 : i32, i32
  }
  func.func @transform_1(%arg0: i32) -> (i32, i32) {
    %c0_i32 = arith.constant 0 : i32
    %c0_i32_0 = arith.constant 0 : i32
    return %arg0, %c0_i32 : i32, i32
  }
}

</mosaic_0001>

<bundles_post_ra>
// kernel: tpu_custom_call.1
= control target key start
LH: loop header
LB: loop body
LE: loop exit
PB: predicated region body
PF: predicated region fallthrough
CT: control target
= control target key end

     0   :  { %6 = vsyncpa [#allocation3], 0  ;;  %s484_s0 = inlined_call_operand.hbm [shape: f32[16,128], index: 0, kind: input, shape index: {}]   ;;  %s485_s1 = inlined_call_operand.hbm [shape: f32[16,128], index: 1, kind: output, shape index: {}]  }
   0x1   :  { %7 = vsyncpa [#allocation4], 0  ;;  %s350_s6 = smov [#allocation2]   ;;  %s302_s10 = scalar_lea.hbm %s484_s0, 256 }
   0x2   :  { %s13_s7 = sshll.u32 %s350_s6, 4  ;;  %p303_p0 = scmp.ne.s32.totalorder %s484_s0, %s302_s10  ;;  %s14_s7 = int_to_ptr.vmem [resolvable:$true] %s13_s7 }
   0x3   :  { %p306_p1 = scmp.lt.u32.totalorder %s302_s10, %s484_s0 }
   0x5   :  { %p308_p2 = pnand %p306_p1, %p303_p0 }
   0x7   :  { %311 = shalt.err (!%p308_p2)
}
   0x8   :  { %s312_s15 = scalar_lea.vmem %s14_s7, 256  ;;  %p317_p4 = scmp.lt.s32.totalorder %s14_s7, %s14_s7 }
   0x9   :  { %p313_p3 = scmp.ne.s32.totalorder %s14_s7, %s312_s15  ;;  %p318_p5 = scmp.lt.s32.totalorder %s312_s15, %s312_s15 }
   0xb   :  { %p319_p6 = por %p318_p5, %p317_p4 }
   0xd   :  { %p320_p7 = pnand %p319_p6, %p313_p3 }
   0xf   :  { %323 = shalt.err (!%p320_p7)
}
  0x10   :  { %s351_s16 = smov 128   ;;  %s352_s17 = smov 8  }
  0x11   :  { %19 = dma.hbm_to_vmem [thread:$0]  %s484_s0, 256, %s14_s7, [#allocation3], %s351_s16, %s351_s16, %s352_s17  }
  0x12   :  { %346 = dma.done.wait [#allocation3], 256  }
  0x13   :  { %347 = vsyncadd [#allocation3], 4294967040  ;;  %v385_v0 = vld [vmem:[#allocation2] sm:$0xff]  ;;  %v387_v1 = vld [vmem:[#allocation2 + $0x8] sm:$0xff]  ;;  %v353_v26 = vmov 683565275  }
  0x14   :  { %v390_v2 = vmul.f32 0.71076757, %v385_v0  ;;  %v393_v3 = vmul.f32 0.71076757, %v387_v1  ;;  %v354_v28 = vmov 2475754826  }
  0x15   :  { %v355_v30 = vmov 2131351028   ;;  %v356_v32 = vmov 2102212464   ;;  %v357_v34 = vmov 920167782  }
  0x16   :  { %v27_v4 = vand.u32 2147483647, %v390_v2  ;;  %v30_v5 = vand.u32 2139095040, %v390_v2  ;;  %v131_v6 = vand.u32 2147483647, %v393_v3  ;;  %v134_v7 = vand.u32 2139095040, %v393_v3 }
  0x17   :  { %v358_v42 = vmov 1326507024   ;;  %vm29_vm14 = vcmp.lt.s32.totalorder %v390_v2, 0  ;;  %s359_s0 = smov [#allocation5]  }
  0x18   :  { %v31_v8 = vshrl.u32 %v30_v5, 23  ;;  %v34_v9 = vand.u32 8388607, %v27_v4  ;;  %v135_v10 = vshrl.u32 %v134_v7, 23  ;;  %v138_v11 = vand.u32 8388607, %v131_v6 }
  0x19   :  { %vm28_vm15 = vcmp.le.f32.partialorder %v27_v4, 0.7853982  ;;  %s256_s20 = sshll.u32 %s359_s0, 4  ;;  %s257_s20 = int_to_ptr.vmem [resolvable:$true] %s256_s20 }
  0x1a   :  { %v268_v12 = vadd.s32 4294967169, %v31_v8  ;;  %v272_v13 = vadd.s32 4294967169, %v135_v10  ;;  %v35_v15 = vor.u32 8388608, %v34_v9  ;;  %v139_v16 = vor.u32 8388608, %v138_v11  ;;  %s324_s21 = scalar_lea.vmem %s257_s20, 256  ;;  %p329_p9 = scmp.lt.s32.totalorder %s257_s20, %s257_s20 }
  0x1b   :  { %p325_p8 = scmp.ne.s32.totalorder %s257_s20, %s324_s21  ;;  %p330_p10 = scmp.lt.s32.totalorder %s324_s21, %s324_s21 }
  0x1c   :  { %v37_v14 = vadd.s32 1, %v268_v12  ;;  %v141_v17 = vadd.s32 1, %v272_v13  ;;  %v403_v22 = vshll.u32 %v35_v15, 8  ;;  %v405_v24 = vshll.u32 %v139_v16, 8 }
  0x1d   :  { %p331_p11 = por %p330_p10, %p329_p9 }
  0x1e   :  { %vm38_vm0 = vcmp.gt.s32.totalorder %v37_v14, 0  ;;  %vm142_vm1 = vcmp.gt.s32.totalorder %v141_v17, 0 }
  0x1f   :  { %v39_v18 = vsel %vm38_vm0, %v37_v14, 0  ;;  %v143_v21 = vsel %vm142_vm1, %v141_v17, 0  ;;  %vm133_vm0 = vcmp.lt.s32.totalorder %v393_v3, 0  ;;  %vm132_vm1 = vcmp.le.f32.partialorder %v131_v6, 0.7853982  ;;  %p332_p12 = pnand %p331_p11, %p325_p8 }
  0x20   :  { %v40_v19 = vshrl.u32 %v39_v18, 5  ;;  %v41_v20 = vand.u32 31, %v39_v18  ;;  %v145_v23 = vand.u32 31, %v143_v21  ;;  %v407_v36 = vshrl.u32 %v143_v21, 5 }
  0x22   :  { %v42_v25 = vsub.s32 32, %v41_v20  ;;  %v44_v27 = vshll.u32 %v353_v26, %v41_v20  ;;  %v47_v29 = vshll.u32 %v354_v28, %v41_v20  ;;  %v50_v31 = vshll.u32 %v355_v30, %v41_v20 }
  0x23   :  { %v53_v33 = vshll.u32 %v356_v32, %v41_v20  ;;  %v56_v35 = vshll.u32 %v357_v34, %v41_v20  ;;  %vm59_vm2 = vcmp.lt.s32.totalorder %v40_v19, 1  ;;  %vm60_vm3 = vcmp.lt.s32.totalorder %v40_v19, 2 }
  0x24   :  { %v43_v37 = vshrl.u32 %v353_v26, %v42_v25  ;;  %v45_v38 = vshrl.u32 %v354_v28, %v42_v25  ;;  %v48_v39 = vshrl.u32 %v355_v30, %v42_v25  ;;  %v51_v40 = vshrl.u32 %v356_v32, %v42_v25 }
  0x25   :  { %v54_v41 = vshrl.u32 %v357_v34, %v42_v25  ;;  %v57_v43 = vshrl.u32 %v358_v42, %v42_v25  ;;  %vm62_vm4 = vcmp.lt.s32.totalorder %v40_v19, 4  ;;  %v146_v47 = vsub.s32 32, %v145_v23 }
  0x26   :  { %v46_v44 = vor.u32 %v45_v38, %v44_v27  ;;  %v49_v45 = vor.u32 %v48_v39, %v47_v29  ;;  %v52_v46 = vor.u32 %v51_v40, %v50_v31  ;;  %vm61_vm5 = vcmp.lt.s32.totalorder %v40_v19, 3 }
  0x27   :  { %v55_v48 = vor.u32 %v54_v41, %v53_v33  ;;  %v58_v49 = vor.u32 %v57_v43, %v56_v35  ;;  %v148_v50 = vshll.u32 %v353_v26, %v145_v23  ;;  %v151_v58 = vshll.u32 %v354_v28, %v145_v23 }
  0x28   :  { %v63_v51 = vsel %vm59_vm2, %v43_v37, %v46_v44  ;;  %v64_v52 = vsel %vm62_vm4, %v52_v46, 2102212464  ;;  %v67_v53 = vsel %vm59_vm2, %v46_v44, %v49_v45  ;;  %v71_v54 = vsel %vm59_vm2, %v49_v45, %v52_v46 }
  0x29   :  { %v65_v55 = vsel %vm61_vm5, %v49_v45, %v64_v52  ;;  %v68_v56 = vsel %vm62_vm4, %v55_v48, 920167782  ;;  %v72_v57 = vsel %vm62_vm4, %v58_v49, 1326507024  ;;  %v147_v61 = vshrl.u32 %v353_v26, %v146_v47 }
  0x2a   :  { %v69_v59 = vsel %vm61_vm5, %v52_v46, %v68_v56  ;;  %v73_v60 = vsel %vm61_vm5, %v55_v48, %v72_v57  ;;  %v149_v62 = vshrl.u32 %v354_v28, %v146_v47  ;;  %v66_v63 = vsel %vm60_vm3, %v63_v51, %v65_v55 }
  0x2b   :  { %v70_v5 = vsel %vm60_vm3, %v67_v53, %v69_v59  ;;  %v74_v7 = vsel %vm60_vm3, %v71_v54, %v73_v60  ;;  %v152_v8 = vshrl.u32 %v355_v30, %v146_v47  ;;  %v154_v15 = vshll.u32 %v355_v30, %v145_v23 }
  0x2c   :  { %v416_v9 = vmul.u32.u64.low %v403_v22, %v74_v7  ;;  %v417_v10 = vmul.u32.u64.high %v403_v22, %v74_v7, %v416_v9  ;;  %v420_v11 = vmul.u32.u64.low %v403_v22, %v70_v5  ;;  %v421_v12 = vmul.u32.u64.high %v403_v22, %v70_v5, %v420_v11 }
  0x2d   :  { %v150_v13 = vor.u32 %v149_v62, %v148_v50  ;;  %v153_v14 = vor.u32 %v152_v8, %v151_v58  ;;  %v155_v16 = vshrl.u32 %v356_v32, %v146_v47  ;;  %v157_v17 = vshll.u32 %v356_v32, %v145_v23 }
  0x2e   :  { %v158_v18 = vshrl.u32 %v357_v34, %v146_v47  ;;  %v160_v20 = vshll.u32 %v357_v34, %v145_v23  ;;  %v161_v21 = vshrl.u32 %v358_v42, %v146_v47  ;;  %v82_v19 = vmul.u32 %v403_v22, %v66_v63 }
  0x2f   :  { %v156_v25 = vor.u32 %v155_v16, %v154_v15  ;;  %vm163_vm6 = vcmp.lt.s32.totalorder %v407_v36, 1  ;;  %vm164_vm7 = vcmp.lt.s32.totalorder %v407_v36, 2  ;;  %vm84_vm8 = vc.u32 %v417_v10, %v420_v11 }
  0x30   :  { %v85_v26 = vadd.s32 1, %v421_v12  ;;  %v159_v27 = vor.u32 %v158_v18, %v157_v17  ;;  %vm165_vm9 = vcmp.lt.s32.totalorder %v407_v36, 3  ;;  %v162_v28 = vor.u32 %v161_v21, %v160_v20 }
  0x31   :  { %vm166_vm10 = vcmp.lt.s32.totalorder %v407_v36, 4  ;;  %v167_v29 = vsel %vm163_vm6, %v147_v61, %v150_v13  ;;  %v171_v23 = vsel %vm163_vm6, %v150_v13, %v153_v14  ;;  %v175_v32 = vsel %vm163_vm6, %v153_v14, %v156_v25 }
  0x32   :  { %v86_v30 = vsel %vm84_vm8, %v85_v26, %v421_v12  ;;  %v168_v22 = vsel %vm166_vm10, %v156_v25, 2102212464  ;;  %v172_v31 = vsel %vm166_vm10, %v159_v27, 920167782  ;;  %v176_v37 = vsel %vm166_vm10, %v162_v28, 1326507024 }
  0x33   :  { %v87_v33 = vadd.s32 %v86_v30, %v82_v19  ;;  %v169_v34 = vsel %vm165_vm9, %v153_v14, %v168_v22  ;;  %v173_v35 = vsel %vm165_vm9, %v156_v25, %v172_v31  ;;  %v177_v40 = vsel %vm165_vm9, %v159_v27, %v176_v37 }
  0x34   :  { %v170_v38 = vsel %vm164_vm7, %v167_v29, %v169_v34  ;;  %v174_v39 = vsel %vm164_vm7, %v171_v23, %v173_v35  ;;  %v178_v42 = vsel %vm164_vm7, %v175_v32, %v177_v40  ;;  %v83_v61 = vadd.s32 %v420_v11, %v417_v10 }
  0x35   :  { %v88_v41 = vadd.s32 536870912, %v87_v33  ;;  %v438_v43 = vmul.u32.u64.low %v405_v24, %v174_v39  ;;  %v439_v44 = vmul.u32.u64.high %v405_v24, %v174_v39, %v438_v43  ;;  %v186_v48 = vmul.u32 %v405_v24, %v170_v38 }
  0x36   :  { %v442_v45 = vmul.u32.u64.low %v405_v24, %v178_v42  ;;  %v443_v46 = vmul.u32.u64.high %v405_v24, %v178_v42, %v442_v45  ;;  %vm119_vm5 = vweird.f32 %v390_v2  ;;  %vm243_vm7 = vcmp.lt.f32.partialorder %v385_v0, 2.21 }
  0x37   :  { %v89_v47 = vshrl.u32 %v88_v41, 30  ;;  %v189_v50 = vadd.s32 1, %v439_v44  ;;  %vm241_vm9 = vcmp.le.f32.partialorder %v385_v0, -2.21 }
  0x38   :  { %vm188_vm11 = vc.u32 %v443_v46, %v438_v43  ;;  %v187_v20 = vadd.s32 %v438_v43, %v443_v46 }
  0x39   :  { %v90_v49 = vshll.u32 %v89_v47, 30  ;;  %v190_v36 = vsel %vm188_vm11, %v189_v50, %v439_v44  ;;  %v113_v10 = vsub.s32 4, %v89_v47  ;;  %vm223_vm11 = vweird.f32 %v393_v3 }
  0x3a   :  { %v191_v52 = vadd.s32 %v190_v36, %v186_v48 }
  0x3b   :  { %v91_v51 = vsub.s32 %v87_v33, %v90_v49  ;;  %v114_v30 = vsel %vm29_vm14, %v113_v10, %v89_v47 }
  0x3c   :  { %v192_v54 = vadd.s32 536870912, %v191_v52  ;;  %v116_v34 = vsel %vm28_vm15, 0, %v114_v30 }
  0x3d   :  { %v93_v53 = vsub.s32 0, %v91_v51  ;;  %v120_v40 = vadd.s32 3, %v116_v34 }
  0x3e   :  { %v193_v56 = vshrl.u32 %v192_v54, 30 }
  0x3f   :  { %v269_v55 = vmin.u32 %v93_v53, %v91_v51  ;;  %v121_v43 = vand.u32 3, %v120_v40 }
  0x40   :  { %v194_v58 = vshll.u32 %v193_v56, 30  ;;  %v217_v39 = vsub.s32 4, %v193_v56 }
  0x41   :  { %v95_v57 = vclz %v269_v55  ;;  %vm126_vm2 = vcmp.eq.s32.totalorder %v121_v43, 2  ;;  %vm123_vm3 = vcmp.eq.s32.totalorder %v121_v43, 0  ;;  %vm122_vm4 = vcmp.lt.s32.totalorder %v121_v43, 2 }
  0x42   :  { %v195_v60 = vsub.s32 %v191_v52, %v194_v58  ;;  %v218_v42 = vsel %vm133_vm0, %v217_v39, %v193_v56 }
  0x43   :  { %v270_v59 = vadd.s32 4294967294, %v95_v57  ;;  %v220_v46 = vsel %vm132_vm1, 0, %v218_v42 }
  0x44   :  { %v197_v62 = vsub.s32 0, %v195_v60  ;;  %v224_v50 = vadd.s32 3, %v220_v46 }
  0x45   :  { %vm271_vm12 = vcmp.lt.s32.totalorder %v270_v59, 0 }
  0x46   :  { %v98_v24 = vsel %vm271_vm12, 0, %v270_v59  ;;  %v273_v8 = vmin.u32 %v197_v62, %v195_v60  ;;  %v225_v53 = vand.u32 3, %v224_v50  ;;  %vm244_vm12 = vcmp.lt.f32.partialorder %v387_v1, 2.21 }
  0x47   :  { %v99_v63 = vsub.s32 32, %v98_v24  ;;  %v100_v5 = vshll.u32 %v91_v51, %v98_v24  ;;  %v103_v7 = vsub.s32 4294967266, %v98_v24 }
  0x48   :  { %v199_v13 = vclz %v273_v8  ;;  %vm230_vm6 = vcmp.eq.s32.totalorder %v225_v53, 2  ;;  %vm227_vm8 = vcmp.eq.s32.totalorder %v225_v53, 0  ;;  %vm226_vm10 = vcmp.lt.s32.totalorder %v225_v53, 2 }
  0x49   :  { %v101_v9 = vshrl.u32 %v83_v61, %v99_v63  ;;  %v104_v12 = vadd.s32 127, %v103_v7 }
  0x4a   :  { %v274_v16 = vadd.s32 4294967294, %v199_v13 }
  0x4b   :  { %v102_v14 = vor.u32 %v101_v9, %v100_v5  ;;  %v105_v15 = vshll.u32 %v104_v12, 23 }
  0x4c   :  { %vm275_vm13 = vcmp.lt.s32.totalorder %v274_v16, 0 }
  0x4d   :  { %v106_v17 = vor.u32 4788187, %v105_v15  ;;  %v109_v18 = vcvt.s32.f32 %v102_v14  ;;  %v202_v11 = vsel %vm275_vm13, 0, %v274_v16  ;;  %vm242_vm13 = vcmp.le.f32.partialorder %v387_v1, -2.21 }
  0x4e   :  { %v203_v19 = vsub.s32 32, %v202_v11  ;;  %v204_v25 = vshll.u32 %v195_v60, %v202_v11  ;;  %v207_v26 = vsub.s32 4294967266, %v202_v11 }
  0x4f   :  { %v107_v21 = vand.u32 2147483647, %v106_v17 }
  0x50   :  { %v205_v28 = vshrl.u32 %v187_v20, %v203_v19  ;;  %v208_v29 = vadd.s32 127, %v207_v26 }
  0x51   :  { %v110_v27 = vmul.f32 %v109_v18, %v107_v21 }
  0x52   :  { %v206_v22 = vor.u32 %v205_v28, %v204_v25  ;;  %v209_v31 = vshll.u32 %v208_v29, 23 }
  0x53   :  { %v111_v23 = vxor.u32 2147483648, %v110_v27 }
  0x54   :  { %v210_v35 = vor.u32 4788187, %v209_v31  ;;  %v213_v37 = vcvt.s32.f32 %v206_v22 }
  0x55   :  { %v112_v32 = vsel %vm29_vm14, %v111_v23, %v110_v27 }
  0x56   :  { %v115_v33 = vsel %vm28_vm15, %v390_v2, %v112_v32  ;;  %v211_v38 = vand.u32 2147483647, %v210_v35 }
  0x57   :  { %294 = vcosq.f32 %v115_v33 }
  0x58   :  { %296 = vsinq.f32 %v115_v33  ;;  %v214_v41 = vmul.f32 %v213_v37, %v211_v38 }
  0x5a   :  { %v215_v4 = vxor.u32 2147483648, %v214_v41 }
  0x5c   :  { %v216_v44 = vsel %vm133_vm0, %v215_v4, %v214_v41 }
  0x5d   :  { %v219_v45 = vsel %vm132_vm1, %v393_v3, %v216_v44 }
  0x5e   :  { %298 = vcosq.f32 %v219_v45 }
  0x5f   :  { %300 = vsinq.f32 %v219_v45 }
  0x61   :  { %v295_v47 = vpop.eup %294 }
  0x62   :  { %v297_v48 = vpop.eup %296  ;;  %v127_v49 = vxor.u32 2147483648, %v295_v47 }
  0x63   :  { %v124_v51 = vxor.u32 2147483648, %v297_v48 }
  0x64   :  { %v128_v6 = vsel %vm126_vm2, %v127_v49, %v297_v48 }
  0x65   :  { %v125_v36 = vsel %vm123_vm3, %v295_v47, %v124_v51 }
  0x66   :  { %v129_v52 = vsel %vm122_vm4, %v125_v36, %v128_v6 }
  0x67   :  { %v130_v54 = vsel %vm119_vm5, nan, %v129_v52 }
  0x68   :  { %v235_v55 = vadd.f32 1.0, %v130_v54  ;;  %v299_v56 = vpop.eup %298 }
  0x69   :  { %v301_v58 = vpop.eup %300  ;;  %v231_v59 = vxor.u32 2147483648, %v299_v56 }
  0x6a   :  { %v237_v57 = vmul.f32 %v235_v55, %v385_v0  ;;  %v228_v2 = vxor.u32 2147483648, %v301_v58 }
  0x6b   :  { %v232_v61 = vsel %vm230_vm6, %v231_v59, %v301_v58 }
  0x6c   :  { %v239_v60 = vmul.f32 0.5, %v237_v57  ;;  %v229_v62 = vsel %vm227_vm8, %v299_v56, %v228_v2 }
  0x6d   :  { %v233_v5 = vsel %vm226_vm10, %v229_v62, %v232_v61 }
  0x6e   :  { %v245_v24 = vsel %vm243_vm7, %v239_v60, %v385_v0  ;;  %v234_v7 = vsel %vm223_vm11, nan, %v233_v5 }
  0x6f   :  { %v247_v63 = vsel %vm241_vm9, 0.0, %v245_v24  ;;  %v236_v8 = vadd.f32 1.0, %v234_v7 }
  0x70   :  { %249 = vst [vmem:[#allocation5] sm:$0xff] %v247_v63 }
  0x71   :  { %v238_v9 = vmul.f32 %v236_v8, %v387_v1 }
  0x73   :  { %v240_v12 = vmul.f32 0.5, %v238_v9 }
  0x75   :  { %v246_v3 = vsel %vm244_vm12, %v240_v12, %v387_v1 }
  0x76   :  { %v248_v13 = vsel %vm242_vm13, 0.0, %v246_v3 }
  0x77   :  { %250 = vst [vmem:[#allocation5 + $0x8] sm:$0xff] %v248_v13 }
  0x78   :  { %335 = shalt.err (!%p332_p12)
}
  0x79   :  { %s336_s24 = scalar_lea.hbm %s485_s1, 256 }
  0x7a   :  { %p337_p13 = scmp.ne.s32.totalorder %s485_s1, %s336_s24  ;;  %p340_p0 = scmp.lt.u32.totalorder %s336_s24, %s485_s1 }
  0x7c   :  { %p342_p1 = pnand %p340_p0, %p337_p13 }
  0x7e   :  { %345 = shalt.err (!%p342_p1)
}
  0x7f   :  { %262 = dma.vmem_to_hbm [thread:$0]  %s257_s20, 256, %s485_s1, [#allocation4], %s351_s16, %s351_s16, %s352_s17  }
  0x80   :  { %348 = dma.done.wait [#allocation4], 256  }
  0x81   :  { %349 = vsyncadd [#allocation4], 4294967040 }
  0x82   :  { %266 = vsyncpa [#allocation3], 1 }
  0x83   :  { %267 = vsyncpa [#allocation4], 1 }

</bundles_post_ra>
